<compile_context>
chip_gen: v7x
topology: tpu7x:2x2x1
jax: 0.10.0
libtpu: 0.0.40
codegen_flags: <defaults>
</compile_context>

<pallas_src>
import jax
import jax.numpy as jnp
from jax.experimental import pallas as pl
from jax.experimental.pallas import tpu as pltpu

_NEG = -1e30  # finite "minus infinity" sentinel (keeps online softmax NaN-free)


# ----------------------------------------------------------------------------
# helpers
# ----------------------------------------------------------------------------
def _round_up(x, m):
    return (x + m - 1) // m * m


def _device_kind():
    try:
        return jax.devices()[0].device_kind.lower()
    except Exception:
        return ""


_KIND = _device_kind()
# v5e / v6e: 128 MiB physical VMEM -> bigger tiles, raise scoped limit to 64 MiB.
# v7x (and unknown): 64 MiB physical / 32 MiB scoped -> stay conservative.
_BIG_VMEM = ("v5" in _KIND) or ("v6" in _KIND)
_VMEM_LIMIT = (64 if _BIG_VMEM else 32) * 1024 * 1024


def _choose_tiles(N):
    """Return (N_pad, tile_dst, tile_src), generation-aware."""
    if N <= 1024:
        # >= 2 dst tiles so both v7x TensorCores get work (also restores some
        # DMA/compute pipelining); 64-row padding keeps int8/bf16 sublane
        # tiling happy (tile_dst multiple of 32).
        n_pad = _round_up(N, 64)
        return n_pad, n_pad // 2, n_pad
    # Large graphs: 512 x tile_src tiles. 512x1024 keeps double-buffered
    # adj+feat+res+out+scratch well under v7x's 32 MiB scoped VMEM; on
    # v5e/v6e we double tile_src to halve per-step overhead further.
    tile_src = 2048 if _BIG_VMEM else 1024
    n_pad = _round_up(N, tile_src)
    return n_pad, 512, tile_src


def _pad2(a, rows, cols):
    pr, pc = rows - a.shape[0], cols - a.shape[1]
    if pr == 0 and pc == 0:
        return a
    return jnp.pad(a, ((0, pr), (0, pc)))


def _scatter_attn(a, H, out_feats):
    """(H, out) attention vector -> block-diagonal (H*out, H) selection matrix
    so that  el = feat @ AL  computes per-head dot products in one matmul."""
    eye = jnp.eye(H, dtype=a.dtype)                        # (H, H)
    return (a[:, :, None] * eye[:, None, :]).reshape(H * out_feats, H)


# ----------------------------------------------------------------------------
# kernel 1: fused projection  (feat [bf16], el||er scores, residual [bf16])
# ----------------------------------------------------------------------------
def _make_proj_kernel(residual, has_res_fc):
    def kernel(*refs):
        if has_res_fc:
            x_ref, w_ref, alr_ref, resw_ref, feat_ref, eler_ref, res_ref = refs
        elif residual:
            x_ref, w_ref, alr_ref, feat_ref, eler_ref, res_ref = refs
            resw_ref = None
        else:
            x_ref, w_ref, alr_ref, feat_ref, eler_ref = refs
            resw_ref = res_ref = None

        xb = x_ref[...].astype(jnp.bfloat16)               # (tile_n, Fin)
        # W / AL||AR / res_W are already bf16 (pre-cast once in the wrapper).
        feat = jnp.dot(xb, w_ref[...], preferred_element_type=jnp.float32)
        feat_b = feat.astype(jnp.bfloat16)                 # cast once, reuse
        feat_ref[...] = feat_b                             # bf16 HBM stream
        # per-head el||er scores via one block-diagonal selection matmul
        eler_ref[...] = jnp.dot(feat_b, alr_ref[...],
                                preferred_element_type=jnp.float32)

        if has_res_fc:
            res_ref[...] = jnp.dot(xb, resw_ref[...],
                                   preferred_element_type=jnp.float32
                                   ).astype(jnp.bfloat16)
        elif residual:
            res_ref[...] = xb                              # identity residual
        # residual == False: no residual slab is written at all
    return kernel


def _project(x, w_bf, alr_bf, resw_bf, *, residual, has_res_fc, tile_n):
    N_pad, Fin = x.shape
    D = w_bf.shape[1]
    H2 = alr_bf.shape[1]

    row = lambda c: pl.BlockSpec((tile_n, c), lambda i: (i, 0))
    full = lambda s: pl.BlockSpec(s, lambda i: (0, 0))

    in_specs = [row(Fin), full((Fin, D)), full((D, H2))]
    args = [x, w_bf, alr_bf]
    if has_res_fc:
        in_specs.append(full((Fin, D)))
        args.append(resw_bf)

    out_specs = [row(D), row(H2)]
    out_shape = [jax.ShapeDtypeStruct((N_pad, D), jnp.bfloat16),
                 jax.ShapeDtypeStruct((N_pad, H2), jnp.float32)]
    if residual:
        out_specs.append(row(D))
        out_shape.append(jax.ShapeDtypeStruct((N_pad, D), jnp.bfloat16))

    outs = pl.pallas_call(
        _make_proj_kernel(residual, has_res_fc),
        grid=(N_pad // tile_n,),
        in_specs=in_specs,
        out_specs=tuple(out_specs),
        out_shape=tuple(out_shape),
        compiler_params=pltpu.CompilerParams(
            dimension_semantics=("parallel",),
            vmem_limit_bytes=_VMEM_LIMIT),
    )(*args)

    if residual:
        feat, eler, res = outs
    else:
        (feat, eler), res = outs, None
    return feat, eler, res


# ----------------------------------------------------------------------------
# kernel 2: tiled edge-softmax aggregation (online / flash-style)
# ----------------------------------------------------------------------------
def _make_attn_kernel(H, out_feats, neg_slope, residual):
    def kernel(cnt_ref, adj_ref, feat_ref, er_ref, elt_ref, *rest):
        if residual:
            res_ref, b_ref, o_ref, m_sc, l_sc, acc_sc = rest
        else:
            b_ref, o_ref, m_sc, l_sc, acc_sc = rest
            res_ref = None

        i = pl.program_id(0)
        j = pl.program_id(1)

        @pl.when(j == 0)
        def _():
            m_sc[...] = jnp.full_like(m_sc, _NEG)
            l_sc[...] = jnp.zeros_like(l_sc)
            acc_sc[...] = jnp.zeros_like(acc_sc)

        # Skip all compute on adjacency tiles with no edges (tile-sparse graphs).
        @pl.when(cnt_ref[i, j] > 0)
        def _():
            mask = adj_ref[...] != 0                      # (td, ts) int8 -> bool
            feat_b = feat_ref[...]                        # bf16 already
            er = er_ref[...]                              # (td, H) dst scores
            elt = elt_ref[...]                            # (H, ts) src scores

            # adj tile loaded once, reused for every head.
            # (H is small here -> static unroll; for H >= 4 consider pairing
            #  heads to bound vreg pressure.)
            for h in range(H):
                sl = slice(h * out_feats, (h + 1) * out_feats)
                s = er[:, h:h + 1] + elt[h:h + 1, :]      # (td, ts)
                s = jnp.where(s > 0, s, neg_slope * s)    # LeakyReLU
                s = jnp.where(mask, s, _NEG)              # mask non-edges

                m_prev = m_sc[:, h:h + 1]
                m_new = jnp.maximum(m_prev, jnp.max(s, axis=-1, keepdims=True))
                corr = jnp.exp(m_prev - m_new)            # finite even if all-masked
                p = jnp.exp(s - m_new)                    # (td, ts)

                l_sc[:, h:h + 1] = corr * l_sc[:, h:h + 1] + jnp.sum(
                    p, axis=-1, keepdims=True)
                acc_sc[:, sl] = corr * acc_sc[:, sl] + jnp.dot(
                    p.astype(jnp.bfloat16), feat_b[:, sl],
                    preferred_element_type=jnp.float32)
                m_sc[:, h:h + 1] = m_new

        @pl.when(j == pl.num_programs(1) - 1)
        def _():
            l = l_sc[...]
            # rows with no accumulated weight (padded rows / isolated nodes)
            # would divide by zero -> clamp; exact divide is free here
            # (epilogue runs once per dst tile).
            inv_l = 1.0 / jnp.where(l > 0.0, l, 1.0)
            for h in range(H):
                sl = slice(h * out_feats, (h + 1) * out_feats)
                acc_sc[:, sl] = acc_sc[:, sl] * inv_l[:, h:h + 1]
            rst = acc_sc[...] + b_ref[...]
            if residual:
                rst = rst + res_ref[...].astype(jnp.float32)
            # ELU (exp only on the clamped-negative branch -> no overflow)
            rst = jnp.where(rst > 0, rst, jnp.exp(jnp.minimum(rst, 0.0)) - 1.0)
            o_ref[...] = rst                              # one lane-dense store
    return kernel


def _attention(adj, counts, feat, er, el_t, res, bias, *, H, out_feats,
               neg_slope, residual, tile_dst, tile_src):
    N_pad = adj.shape[0]
    D = H * out_feats
    n_dst = N_pad // tile_dst
    n_src = N_pad // tile_src

    in_specs = [
        pl.BlockSpec((tile_dst, tile_src), lambda i, j, cnt: (i, j)),  # adj (i8)
        pl.BlockSpec((tile_src, D), lambda i, j, cnt: (j, 0)),         # src feats (bf16)
        pl.BlockSpec((tile_dst, H), lambda i, j, cnt: (i, 0)),         # er (dst)
        pl.BlockSpec((H, tile_src), lambda i, j, cnt: (0, j)),         # el (src, lane-dense)
    ]
    args = [counts, adj, feat, er, el_t]
    if residual:
        in_specs.append(pl.BlockSpec((tile_dst, D), lambda i, j, cnt: (i, 0)))
        args.append(res)
    in_specs.append(pl.BlockSpec((1, D), lambda i, j, cnt: (0, 0)))    # bias
    args.append(bias)

    grid_spec = pltpu.PrefetchScalarGridSpec(
        num_scalar_prefetch=1,                 # per-tile edge counts -> SMEM
        grid=(n_dst, n_src),
        in_specs=in_specs,
        out_specs=pl.BlockSpec((tile_dst, D), lambda i, j, cnt: (i, 0)),
        scratch_shapes=[
            pltpu.VMEM((tile_dst, H), jnp.float32),   # running max
            pltpu.VMEM((tile_dst, H), jnp.float32),   # running sum
            pltpu.VMEM((tile_dst, D), jnp.float32),   # running weighted feats
        ])

    return pl.pallas_call(
        _make_attn_kernel(H, out_feats, neg_slope, residual),
        grid_spec=grid_spec,
        out_shape=jax.ShapeDtypeStruct((N_pad, D), jnp.float32),
        compiler_params=pltpu.CompilerParams(
            dimension_semantics=("parallel", "arbitrary"),
            vmem_limit_bytes=_VMEM_LIMIT),
    )(*args)


# ----------------------------------------------------------------------------
# layer / network wrappers
# ----------------------------------------------------------------------------
def gatconv_forward(x_pad, adj_pad, counts, p, *, neg_slope, tile_dst, tile_src):
    H, out_feats = p["H"], p["out_feats"]
    D = H * out_feats
    residual = p["residual"]
    has_res_fc = residual and (p["res_W"] is not None)
    if residual and not has_res_fc:
        assert x_pad.shape[1] == D, (
            "identity residual requires in_feats == num_heads * out_feats")

    # pre-cast all weights to bf16 once (no per-tile cast inside the kernels)
    alr_bf = jnp.concatenate(
        [_scatter_attn(p["attn_l"], H, out_feats),
         _scatter_attn(p["attn_r"], H, out_feats)], axis=1).astype(jnp.bfloat16)
    w_bf = p["W"].astype(jnp.bfloat16)
    resw_bf = p["res_W"].astype(jnp.bfloat16) if has_res_fc else None

    feat, eler, res = _project(x_pad, w_bf, alr_bf, resw_bf,
                               residual=residual, has_res_fc=has_res_fc,
                               tile_n=tile_dst)
    el_t = eler[:, :H].T   # (H, N_pad): src scores lane-dense (layout plumbing)
    er = eler[:, H:]       # (N_pad, H): dst scores
    return _attention(adj_pad, counts, feat, er, el_t, res, p["bias"],
                      H=H, out_feats=out_feats, neg_slope=neg_slope,
                      residual=residual, tile_dst=tile_dst, tile_src=tile_src)


def init_gat_params(key, n_dim, hidden_dim, out_dim, n_layers,
                    n_heads, n_heads_out, residual, encoding=False):
    """Deterministic parameter init matching GAT.__init__ shapes."""
    last_residual = encoding and residual
    layer_cfgs = [(n_dim, hidden_dim // n_heads, n_heads, residual)]
    for _ in range(1, n_layers - 1):
        layer_cfgs.append((hidden_dim, hidden_dim // n_heads, n_heads, residual))
    layer_cfgs.append((hidden_dim, out_dim, n_heads_out, last_residual))

    params = []
    for (in_f, out_f, heads, res) in layer_cfgs:
        key, k1, k2, k3, k4 = jax.random.split(key, 5)
        W = 0.1 * jax.random.normal(k1, (in_f, heads * out_f), jnp.float32)
        attn_l = 0.1 * jax.random.normal(k2, (heads, out_f), jnp.float32)
        attn_r = 0.1 * jax.random.normal(k3, (heads, out_f), jnp.float32)
        bias = jnp.zeros((1, heads * out_f), jnp.float32)
        if res and in_f != heads * out_f:
            res_W = 0.1 * jax.random.normal(k4, (in_f, heads * out_f), jnp.float32)
        else:
            res_W = None
        params.append(dict(W=W, attn_l=attn_l, attn_r=attn_r, bias=bias,
                           res_W=res_W, H=heads, out_feats=out_f, residual=res))
    return params


def gat_forward(adj, x, params, neg_slope=0.2, return_hidden=False):
    N = x.shape[0]
    N_pad, tile_dst, tile_src = _choose_tiles(N)
    h = _pad2(x.astype(jnp.float32), N_pad, x.shape[1])
    adj_pad = _pad2(adj.astype(jnp.int8), N_pad, N_pad)    # int8 mask
    n_dst, n_src = N_pad // tile_dst, N_pad // tile_src
    # per-(dst,src)-tile edge counts (shared across layers): lets kernel 2
    # skip empty adjacency tiles entirely.
    counts = adj_pad.reshape(n_dst, tile_dst, n_src, tile_src).sum(
        axis=(1, 3), dtype=jnp.int32)

    hidden_list = []
    for p in params:
        h = gatconv_forward(h, adj_pad, counts, p, neg_slope=neg_slope,
                            tile_dst=tile_dst, tile_src=tile_src)
        hidden_list.append(h[:N])        # kernel emits the flatten(1) layout
    if return_hidden:
        return h[:N], hidden_list
    return h[:N]


# ----------------------------------------------------------------------------
# pure-JAX reference (f32) for validation
# ----------------------------------------------------------------------------
def _gatconv_ref(x, adj, p, neg_slope):
    H, out = p["H"], p["out_feats"]
    feat = (x @ p["W"]).reshape(-1, H, out)
    el = jnp.einsum("nho,ho->nh", feat, p["attn_l"])
    er = jnp.einsum("nho,ho->nh", feat, p["attn_r"])
    e = er[:, None, :] + el[None, :, :]                 # (dst, src, H)
    e = jnp.where(e > 0, e, neg_slope * e)
    e = jnp.where((adj > 0)[:, :, None], e, _NEG)
    e = e - e.max(axis=1, keepdims=True)
    pr = jnp.exp(e)
    alpha = pr / pr.sum(axis=1, keepdims=True)
    rst = jnp.einsum("dsh,sho->dho", alpha, feat)
    if p["residual"]:
        if p["res_W"] is not None:
            rst = rst + (x @ p["res_W"]).reshape(-1, H, out)
        else:
            rst = rst + x.reshape(-1, H, out)
    rst = rst.reshape(-1, H * out) + p["bias"]
    return jnp.where(rst > 0, rst, jnp.exp(jnp.minimum(rst, 0.0)) - 1.0)


def gat_forward_ref(adj, x, params, neg_slope=0.2):
    h = x.astype(jnp.float32)
    adj_f = adj.astype(jnp.float32)
    for p in params:
        h = _gatconv_ref(h, adj_f, p, neg_slope)
    return h


# ----------------------------------------------------------------------------
if __name__ == "__main__":
    # Small config: n_dim=8, hidden_dim=16, out_dim=8, n_layers=3,
    #               n_heads=2, n_heads_out=1, residual=True, encoding=False
    N = 16
    n_dim, hidden_dim, out_dim = 8, 16, 8
    n_layers, n_heads, n_heads_out = 3, 2, 1

    key = jax.random.PRNGKey(0)
    kx, kadj, kp = jax.random.split(key, 3)

    x = jax.random.normal(kx, (N, n_dim), jnp.float32)

    # random sparse-ish graph + self loops; adj[dst, src] as int8 mask
    adj = (jax.random.uniform(kadj, (N, N)) < 0.3).astype(jnp.int8)
    adj = jnp.maximum(adj, jnp.eye(N, dtype=jnp.int8))

    params = init_gat_params(kp, n_dim, hidden_dim, out_dim, n_layers,
                             n_heads, n_heads_out, residual=True)

    out = gat_forward(adj, x, params)
    out = jax.block_until_ready(out)
    assert out.shape == (N, n_heads_out * out_dim)
    assert bool(jnp.all(jnp.isfinite(out)))

    # relaxed tolerance: kernel uses bf16 feats / weights on the MXU
    ref = gat_forward_ref(adj, x, params)
    err = float(jnp.max(jnp.abs(out - ref)))
    assert err < 5e-2, f"mismatch vs reference: {err}"

    print("KERNEL_OK")
</pallas_src>

<mosaic_0001>
module attributes {stable_mosaic.version = 11 : i64} {
  func.func @kernel(%arg0: i32, %arg1: memref<32x8xf32, #tpu.memory_space<vmem>>, %arg2: memref<8x16xbf16, #tpu.memory_space<vmem>>, %arg3: memref<16x4xbf16, #tpu.memory_space<vmem>>, %arg4: memref<8x16xbf16, #tpu.memory_space<vmem>>, %arg5: memref<32x16xbf16, #tpu.memory_space<vmem>>, %arg6: memref<32x4xf32, #tpu.memory_space<vmem>>, %arg7: memref<32x16xbf16, #tpu.memory_space<vmem>>) attributes {dimension_semantics = [#tpu.dimension_semantics<parallel>], iteration_bounds = array<i64: 2>, scalar_prefetch = 0 : i64, scratch_operands = 0 : i64, tpu.core_type = #tpu.core_type<tc>, window_params = [{transform_indices = @transform_0, window_bounds = array<i64: 32, 8>}, {pipeline_mode = #tpu.pipeline_mode<synchronous>, transform_indices = @transform_1, window_bounds = array<i64: 8, 16>}, {pipeline_mode = #tpu.pipeline_mode<synchronous>, transform_indices = @transform_2, window_bounds = array<i64: 16, 4>}, {pipeline_mode = #tpu.pipeline_mode<synchronous>, transform_indices = @transform_3, window_bounds = array<i64: 8, 16>}, {transform_indices = @transform_4, window_bounds = array<i64: 32, 16>}, {transform_indices = @transform_5, window_bounds = array<i64: 32, 4>}, {transform_indices = @transform_6, window_bounds = array<i64: 32, 16>}]} {
    %c0 = arith.constant 0 : index
    %c0_0 = arith.constant 0 : index
    %0 = vector.load %arg1[%c0, %c0_0] : memref<32x8xf32, #tpu.memory_space<vmem>>, vector<32x8xf32>
    %1 = arith.truncf %0 : vector<32x8xf32> to vector<32x8xbf16>
    %c0_1 = arith.constant 0 : index
    %c0_2 = arith.constant 0 : index
    %2 = vector.load %arg2[%c0_1, %c0_2] : memref<8x16xbf16, #tpu.memory_space<vmem>>, vector<8x16xbf16>
    %cst = arith.constant dense<0.000000e+00> : vector<32x16xf32>
    %3 = tpu.matmul %1, %2, %cst {dimension_numbers = #tpu.dot_dimension_numbers<[1], [0], [0], [1], [0, 0, 1, 1], [], []>} : vector<32x8xbf16>, vector<8x16xbf16>, vector<32x16xf32> -> vector<32x16xf32>
    %4 = arith.truncf %3 : vector<32x16xf32> to vector<32x16xbf16>
    %c0_3 = arith.constant 0 : index
    %c0_4 = arith.constant 0 : index
    %5 = vector.load %arg5[%c0_3, %c0_4] : memref<32x16xbf16, #tpu.memory_space<vmem>>, vector<32x16xbf16>
    tpu.vector_store %arg5[%c0_3, %c0_4], %4 {strides = array<i32>} : memref<32x16xbf16, #tpu.memory_space<vmem>>, vector<32x16xbf16>,
    %c0_5 = arith.constant 0 : index
    %c0_6 = arith.constant 0 : index
    %6 = vector.load %arg3[%c0_5, %c0_6] : memref<16x4xbf16, #tpu.memory_space<vmem>>, vector<16x4xbf16>
    %cst_7 = arith.constant dense<0.000000e+00> : vector<32x4xf32>
    %7 = tpu.matmul %4, %6, %cst_7 {dimension_numbers = #tpu.dot_dimension_numbers<[1], [0], [0], [1], [0, 0, 1, 1], [], []>} : vector<32x16xbf16>, vector<16x4xbf16>, vector<32x4xf32> -> vector<32x4xf32>
    %c0_8 = arith.constant 0 : index
    %c0_9 = arith.constant 0 : index
    %8 = vector.load %arg6[%c0_8, %c0_9] : memref<32x4xf32, #tpu.memory_space<vmem>>, vector<32x4xf32>
    tpu.vector_store %arg6[%c0_8, %c0_9], %7 {strides = array<i32>} : memref<32x4xf32, #tpu.memory_space<vmem>>, vector<32x4xf32>,
    %c0_10 = arith.constant 0 : index
    %c0_11 = arith.constant 0 : index
    %9 = vector.load %arg4[%c0_10, %c0_11] : memref<8x16xbf16, #tpu.memory_space<vmem>>, vector<8x16xbf16>
    %cst_12 = arith.constant dense<0.000000e+00> : vector<32x16xf32>
    %10 = tpu.matmul %1, %9, %cst_12 {dimension_numbers = #tpu.dot_dimension_numbers<[1], [0], [0], [1], [0, 0, 1, 1], [], []>} : vector<32x8xbf16>, vector<8x16xbf16>, vector<32x16xf32> -> vector<32x16xf32>
    %11 = arith.truncf %10 : vector<32x16xf32> to vector<32x16xbf16>
    %c0_13 = arith.constant 0 : index
    %c0_14 = arith.constant 0 : index
    %12 = vector.load %arg7[%c0_13, %c0_14] : memref<32x16xbf16, #tpu.memory_space<vmem>>, vector<32x16xbf16>
    tpu.vector_store %arg7[%c0_13, %c0_14], %11 {strides = array<i32>} : memref<32x16xbf16, #tpu.memory_space<vmem>>, vector<32x16xbf16>,
    return
  }
  func.func @transform_0(%arg0: i32) -> (i32, i32) {
    %c0_i32 = arith.constant 0 : i32
    %c0_i32_0 = arith.constant 0 : i32
    return %arg0, %c0_i32 : i32, i32
  }
  func.func @transform_1(%arg0: i32) -> (i32, i32) {
    %c0_i32 = arith.constant 0 : i32
    %c0_i32_0 = arith.constant 0 : i32
    %c0_i32_1 = arith.constant 0 : i32
    return %c0_i32, %c0_i32_0 : i32, i32
  }
  func.func @transform_2(%arg0: i32) -> (i32, i32) {
    %c0_i32 = arith.constant 0 : i32
    %c0_i32_0 = arith.constant 0 : i32
    %c0_i32_1 = arith.constant 0 : i32
    return %c0_i32, %c0_i32_0 : i32, i32
  }
  func.func @transform_3(%arg0: i32) -> (i32, i32) {
    %c0_i32 = arith.constant 0 : i32
    %c0_i32_0 = arith.constant 0 : i32
    %c0_i32_1 = arith.constant 0 : i32
    return %c0_i32, %c0_i32_0 : i32, i32
  }
  func.func @transform_4(%arg0: i32) -> (i32, i32) {
    %c0_i32 = arith.constant 0 : i32
    %c0_i32_0 = arith.constant 0 : i32
    return %arg0, %c0_i32 : i32, i32
  }
  func.func @transform_5(%arg0: i32) -> (i32, i32) {
    %c0_i32 = arith.constant 0 : i32
    %c0_i32_0 = arith.constant 0 : i32
    return %arg0, %c0_i32 : i32, i32
  }
  func.func @transform_6(%arg0: i32) -> (i32, i32) {
    %c0_i32 = arith.constant 0 : i32
    %c0_i32_0 = arith.constant 0 : i32
    return %arg0, %c0_i32 : i32, i32
  }
}

</mosaic_0001>

<bundles_post_ra>
// kernel: tpu_custom_call.1
= control target key start
LH: loop header
LB: loop body
LE: loop exit
PB: predicated region body
PF: predicated region fallthrough
CT: control target
= control target key end

     0   :  { %s756_s21 = smov 0   ;;  %s808_s0 = inlined_call_operand.vmem [shape: f32[64,8], index: 0, kind: input, shape index: {}]   ;;  %s809_s1 = inlined_call_operand.vmem [shape: bf16[8,16], index: 1, kind: input, shape index: {}]   ;;  %s810_s2 = inlined_call_operand.vmem [shape: bf16[16,4], index: 2, kind: input, shape index: {}]   ;;  %s811_s3 = inlined_call_operand.vmem [shape: bf16[8,16], index: 3, kind: input, shape index: {}]   ;;  %s812_s4 = inlined_call_operand.vmem [shape: bf16[64,16], index: 4, kind: output, shape index: {0}]   ;;  %s813_s5 = inlined_call_operand.vmem [shape: f32[64,4], index: 5, kind: output, shape index: {1}]   ;;  %s814_s6 = inlined_call_operand.vmem [shape: bf16[64,16], index: 6, kind: output, shape index: {2}]  }
   0x1 LB: > { %s637_s22 = sadd.s32 4294967295, %s719_s21   ;;  %p641_p0 = scmp.ge.s32.totalorder %s719_s21, 1  ;;  %s719_s21 = sphi %s756_s21, %s17_s21  }
   0x2   : > { %p218_p1 = scmp.lt.s32.totalorder %s719_s21, 3 }
   0x4   : > { %p219_p2 = pnand %p641_p0, %p218_p1 }
   0x5   : > { %v289_v0 = vld [vmem:[%s809_s1] sm:$0xf] (!%p219_p2)  ;;  %vm297_vm0 = vcmask (!%p219_p2), 1043456   ;;  %s642_s25 = sshll.u32 (!%p219_p2), %s637_s22, 2  ;;  %vm290_vm1 = vcmask (!%p219_p2), 64512   ;;  %vm366_vm2 = vcmask (!%p219_p2), 125952  }
   0x6   : > { %222 = sbr.rel (%p219_p2) target bundleno = 454 (0x1c6), region = 36  ;;  %702 = vmatprep.subr.msk.bf16.mxu0 (!%p219_p2), %vm297_vm0, %v289_v0  ;;  %v299_v1 = vsel (!%p219_p2), %vm297_vm0, %v289_v0, 0  ;;  %p259_p3 = scmp.lt.s32.totalorder (!%p219_p2), %s642_s25, 7  ;;  %v440_v2 = vld [vmem:[%s811_s3] sm:$0xf] (!%p219_p2)  ;;  %vm379_vm3 = vcmask (!%p219_p2), 130048  }
   0x7   : > { %685 = vmatpush3.bf16.msra.mxu0 (!%p219_p2), %v299_v1  ;;  %v442_v9 = vsel (!%p219_p2), %vm297_vm0, %v440_v2, 0  ;;  %v712_v10 = vld [vmem:[%s810_s2] sm:$0xff] (!%p219_p2)   ;;  %vm435_vm4 = vcmask (!%p219_p2), 31744  }
   0x8   : > { %703 = vmatprep.subr.msk.bf16.mxu0 (!%p219_p2), %vm297_vm0, %v440_v2  ;;  %690 = vmatprep.subr.bf16.mxu1 (!%p219_p2), %v712_v10 }
   0x9   : > { %691 = vmatpush3.bf16.msra.mxu1 (!%p219_p2), %v712_v10 }
   0xd   : > { %s816_s25 = smov (!%p259_p3, %s642_s25), 7 }
   0xe   : > { %s643_s28 = sshll.u32 %s816_s25, 3  ;;  %s645_s10 = sshll.u32 %s816_s25, 2 }
   0xf   : > { %s262_s7 = scalar_lea.vmem %s808_s0, %s643_s28  ;;  %s268_s13 = scalar_lea.vmem %s812_s4, %s645_s10 }
  0x10   : > { %v283_v3 = vld [vmem:[%s262_s7] sm:$0xff]  ;;  %v284_v4 = vld [vmem:[%s262_s7 + $0x8] sm:$0xff]  ;;  %v285_v5 = vld [vmem:[%s262_s7 + $0x10] sm:$0xff]  ;;  %s280_s16 = scalar_lea.vmem %s814_s6, %s645_s10  ;;  %s274_s19 = scalar_lea.vmem %s813_s5, %s643_s28 }
  0x11   : > { %v287_v6 = vpack.c.bf16 %v284_v4, %v283_v3  ;;  %v286_v7 = vld [vmem:[%s262_s7 + $0x18] sm:$0xff] }
  0x12   : > { %v288_v8 = vpack.c.bf16 %v286_v7, %v285_v5 }
  0x13   : > { %686 = vmatprep.mubr.msk.bf16.mxu0 %vm290_vm1, %v287_v6 }
  0x14   : > { %687 = vmatmul.mubr.msk.bf16.vlgmr.msra.gmra.mrb[0].mxu0 %vm290_vm1, %v288_v8 }
  0x15   : > { %697 = vmatpush3.bf16.msra.mxu0 %v442_v9  ;;  %698 = vmatprep.mubr.msk.bf16.mxu0 %vm290_vm1, %v287_v6 }
  0x1c   : > { %699 = vmatmul.mubr.msk.bf16.vlgmr.msra.gmra.mrb[4].mxu0 %vm290_vm1, %v288_v8 }
  0xe7   : > { %v688_v11 = vpop.f32.mrb[0].mxu0 }
  0xe8   : > { %v335_v12 = vpop.f32.mrb[1].mxu0  ;;  %v669_v19 = vpack.c.bf16 %v688_v11, %v688_v11 }
  0xe9   : > { %v667_v13 = vpack.c.bf16 %v335_v12, %v335_v12  ;;  %v689_v14 = vpop.f32.mrb[2].mxu0 }
  0xea   : > { %v351_v15 = vpack.c.bf16 %v689_v14, %v688_v11  ;;  %v338_v16 = vpop.f32.mrb[3].mxu0  ;;  %v670_v20 = vpack.c.bf16 %v689_v14, %v689_v14  ;;  %369 = vst.msk [vmem:[%s268_s13 + $0x8] sm:$0xf] %vm366_vm2, %v669_v19 }
  0xeb   : > { %367 = vst.msk [vmem:[%s268_s13] sm:$0xf] %vm366_vm2, %v667_v13  ;;  %v668_v17 = vpack.c.bf16 %v338_v16, %v338_v16  ;;  %v350_v18 = vpack.c.bf16 %v338_v16, %v335_v12 }
  0xec   : > { %370 = vst.msk [vmem:[%s268_s13 + $0xc] sm:$0xf] %vm366_vm2, %v670_v20 }
  0xed   : > { %368 = vst.msk [vmem:[%s268_s13 + $0x4] sm:$0xf] %vm366_vm2, %v668_v17  ;;  %692 = vmatprep.mubr.msk.bf16.mxu1 %vm379_vm3, %v350_v18 }
  0xee   : > { %693 = vmatmul.mubr.msk.bf16.vlgmr.msra.gmra.mrb[0].mxu1 %vm379_vm3, %v351_v15 }
  0xef   : > { %v700_v21 = vpop.f32.mrb[4].mxu0 }
  0xf0   : > { %v478_v22 = vpop.f32.mrb[5].mxu0  ;;  %v673_v25 = vpack.c.bf16 %v700_v21, %v700_v21 }
  0xf1   : > { %v671_v23 = vpack.c.bf16 %v478_v22, %v478_v22  ;;  %v701_v24 = vpop.f32.mrb[6].mxu0 }
  0xf2   : > { %v481_v26 = vpop.f32.mrb[7].mxu0  ;;  %v674_v27 = vpack.c.bf16 %v701_v24, %v701_v24  ;;  %511 = vst.msk [vmem:[%s280_s16 + $0x8] sm:$0xf] %vm366_vm2, %v673_v25 }
  0xf3   : > { %509 = vst.msk [vmem:[%s280_s16] sm:$0xf] %vm366_vm2, %v671_v23  ;;  %v672_v28 = vpack.c.bf16 %v481_v26, %v481_v26 }
  0xf4   : > { %512 = vst.msk [vmem:[%s280_s16 + $0xc] sm:$0xf] %vm366_vm2, %v674_v27 }
  0xf5   : > { %510 = vst.msk [vmem:[%s280_s16 + $0x4] sm:$0xf] %vm366_vm2, %v672_v28 }
 0x1c1   : > { %v694_v29 = vpop.f32.mrb[0].mxu1 }
 0x1c2   : > { %v420_v30 = vpop.f32.mrb[1].mxu1  ;;  %438 = vst.msk [vmem:[%s274_s19 + $0x10] sm:$0xff] %vm435_vm4, %v694_v29 }
 0x1c3   : > { %436 = vst.msk [vmem:[%s274_s19] sm:$0xff] %vm435_vm4, %v420_v30  ;;  %v695_v31 = vpop.f32.mrb[2].mxu1 }
 0x1c4   : > { %v423_v32 = vpop.f32.mrb[3].mxu1  ;;  %439 = vst.msk [vmem:[%s274_s19 + $0x18] sm:$0xff] %vm435_vm4, %v695_v31 }
 0x1c5   : > { %437 = vst.msk [vmem:[%s274_s19 + $0x8] sm:$0xff] %vm435_vm4, %v423_v32 }
 0x1c6 PF: > { %s17_s21 = sadd.s32 1, %s719_s21  }
 0x1c7   : > { %p14_p4 = scmp.ge.s32.totalorder %s17_s21, 4  }
 0x1c9   :  { %16 = sbr.rel (!%p14_p4) target bundleno = 1 (0x1), region = 90 }

</bundles_post_ra>
